<compile_context>
chip_gen: v5e
topology: v5e:2x2
jax: 0.10.0
libtpu: 0.0.40
codegen_flags: <defaults>
</compile_context>

<pallas_src>
import math
import functools

import jax
import jax.numpy as jnp
from jax.experimental import pallas as pl
from jax.experimental.pallas import tpu as pltpu


def _roberta_attention_kernel(
    x_ref, mask_ref,
    wq_ref, bq_ref, wk_ref, bk_ref, wv_ref, bv_ref,
    wo_ref, bo_ref, gamma_ref, beta_ref,
    out_ref,
    k_scratch, v_scratch, q_scratch, ctx_scratch,
    *, num_heads, head_dim, tq, ln_eps,
):
    qi = pl.program_id(1)
    seq_len = k_scratch.shape[1]

    # ---- K / V for the full sequence: computed once per batch element ------
    # Full-width (H-deep, H-wide) projections keep the MXU well fed; the
    # per-head lane extraction into head-major (NH, S, D) scratch is the one
    # relayout we pay per batch element so the hot per-tile head loop only
    # does leading-axis (aligned) reads.
    @pl.when(qi == 0)
    def _():
        xb = x_ref[0].astype(jnp.bfloat16)                       # (S, H)
        k_full = (jnp.dot(xb, wk_ref[...],
                          preferred_element_type=jnp.float32)
                  + bk_ref[...]).astype(jnp.bfloat16)            # (S, H)
        v_full = (jnp.dot(xb, wv_ref[...],
                          preferred_element_type=jnp.float32)
                  + bv_ref[...]).astype(jnp.bfloat16)            # (S, H)
        for h in range(num_heads):
            sl = slice(h * head_dim, (h + 1) * head_dim)
            k_scratch[h] = k_full[:, sl]                         # (S, D)
            v_scratch[h] = v_full[:, sl]                         # (S, D)

    # ---- Q projection for this query tile (1/sqrt(D) pre-folded into Wq/bq)
    q_start = pl.multiple_of(qi * tq, tq)
    x_tile = x_ref[0, pl.ds(q_start, tq), :]                     # (TQ, H) f32
    q = jnp.dot(x_tile.astype(jnp.bfloat16), wq_ref[...],
                preferred_element_type=jnp.float32) + bq_ref[...]
    # Stage q in VMEM so the unrolled head loop does not keep the full (TQ,H)
    # value live in vregs.
    q_scratch[...] = q.astype(jnp.bfloat16)                      # (TQ, H) bf16

    # Hoist the mask broadcast out of the head loop (JAX does not CSE it).
    mask_b = jnp.broadcast_to(mask_ref[0], (tq, seq_len))        # (TQ, S) f32

    # ---- per-head scaled dot-product attention (unrolled) -------------------
    for h in range(num_heads):
        sl = slice(h * head_dim, (h + 1) * head_dim)
        qh = q_scratch[:, sl]                                    # (TQ, D) bf16
        kh = k_scratch[h]                                        # (S,  D) bf16
        vh = v_scratch[h]                                        # (S,  D) bf16
        # q . k^T : contract over D on both sides (scale already in Wq).
        scores = jax.lax.dot_general(
            qh, kh, (((1,), (1,)), ((), ())),
            preferred_element_type=jnp.float32)                  # (TQ, S) f32
        scores = scores + mask_b
        m = jnp.max(scores, axis=-1, keepdims=True)
        e = jnp.exp(scores - m)
        denom = jnp.sum(e, axis=-1, keepdims=True)
        probs = e * pl.reciprocal(denom, approx=True)            # softmax, f32
        # attention-probs dropout is identity in eval mode.
        ctx_h = jnp.dot(probs.astype(jnp.bfloat16), vh,
                        preferred_element_type=jnp.float32)      # (TQ, D) f32
        # Park this head's context in VMEM (short vreg live range) while
        # preserving a single full H-deep Wo contraction below.
        ctx_scratch[:, sl] = ctx_h.astype(jnp.bfloat16)

    # ---- output dense + residual + LayerNorm (f32) --------------------------
    proj = jnp.dot(ctx_scratch[...], wo_ref[...],
                   preferred_element_type=jnp.float32) + bo_ref[...]
    y = proj + x_tile                                            # residual
    mean = jnp.mean(y, axis=-1, keepdims=True)
    cent = y - mean
    var = jnp.mean(cent * cent, axis=-1, keepdims=True)
    normed = cent * jax.lax.rsqrt(var + ln_eps)
    # Output kept f32 to match the reference; cast here if the consumer
    # accepts bf16 to halve the (B,S,H) writeback.
    out_ref[0] = normed * gamma_ref[...] + beta_ref[...]


def roberta_attention(x, attn_mask, params, *, num_heads, ln_eps=1e-5, tq=None):
    """x: (B, S, H) f32; attn_mask: (B, 1, S) additive f32 mask."""
    B, S, H = x.shape
    assert H % num_heads == 0
    head_dim = H // num_heads
    if tq is None:
        # 256 fills the 256-wide MXU on v6e/v7x; 128 is the sweet spot on v5e
        # (pass tq=128 explicitly there).
        for cand in (256, 128):
            if S % cand == 0:
                tq = cand
                break
        else:
            tq = S
    # TODO(synk): pad or use pl.BoundedSlice for S not divisible by tq.
    assert S % tq == 0, "sequence length must be divisible by the query tile"
    n_q = S // tq

    kernel = functools.partial(
        _roberta_attention_kernel,
        num_heads=num_heads, head_dim=head_dim, tq=tq, ln_eps=ln_eps)

    # Fold the 1/sqrt(head_dim) attention scale into Wq / bq on the host, then
    # cast weights to bf16 (halves HBM traffic, doubles MXU throughput; f32
    # accumulation via preferred_element_type).
    inv_sqrt_d = 1.0 / math.sqrt(head_dim)
    wq = (params["wq"] * inv_sqrt_d).astype(jnp.bfloat16)
    bq = params["bq"] * inv_sqrt_d
    wk = params["wk"].astype(jnp.bfloat16)
    wv = params["wv"].astype(jnp.bfloat16)
    wo = params["wo"].astype(jnp.bfloat16)

    args = (x, attn_mask,
            wq, bq, wk, params["bk"], wv, params["bv"],
            wo, params["bo"], params["gamma"], params["beta"])

    def const_spec(shape):
        # Constant block index -> the pipeline does not re-DMA these between
        # grid steps; default double buffering costs only a little extra VMEM
        # (well within the 32 MiB limit), so no pl.Buffered(1) fallback needed.
        return pl.BlockSpec(shape, lambda b, q: (0,) * len(shape))

    grid_spec = pltpu.PrefetchScalarGridSpec(
        num_scalar_prefetch=0,
        grid=(B, n_q),
        in_specs=[
            pl.BlockSpec((1, S, H), lambda b, q: (b, 0, 0)),     # x (full seq)
            pl.BlockSpec((1, 1, S), lambda b, q: (b, 0, 0)),     # additive mask
            const_spec((H, H)), const_spec((1, H)),              # Wq, bq
            const_spec((H, H)), const_spec((1, H)),              # Wk, bk
            const_spec((H, H)), const_spec((1, H)),              # Wv, bv
            const_spec((H, H)), const_spec((1, H)),              # Wo, bo
            const_spec((1, H)), const_spec((1, H)),              # gamma, beta
        ],
        out_specs=pl.BlockSpec((1, tq, H), lambda b, q: (b, q, 0)),
        scratch_shapes=[
            pltpu.VMEM((num_heads, S, head_dim), jnp.bfloat16),  # K head-major
            pltpu.VMEM((num_heads, S, head_dim), jnp.bfloat16),  # V head-major
            pltpu.VMEM((tq, H), jnp.bfloat16),                   # q stage
            pltpu.VMEM((tq, H), jnp.bfloat16),                   # ctx stage
        ],
    )

    return pl.pallas_call(
        kernel,
        out_shape=jax.ShapeDtypeStruct((B, S, H), jnp.float32),
        grid_spec=grid_spec,
        compiler_params=pltpu.CompilerParams(
            # The q axis must stay "arbitrary": K/V scratch reuse relies on
            # sequential in-order execution of query tiles per batch element.
            dimension_semantics=("parallel", "arbitrary"),
            vmem_limit_bytes=32 * 1024 * 1024),
    )(*args)


def _reference(x, attn_mask, params, *, num_heads, ln_eps=1e-5):
    """Pure-JAX f32 reference mirroring the PyTorch forward (eval mode)."""
    B, S, H = x.shape
    D = H // num_heads
    q = x @ params["wq"] + params["bq"]
    k = x @ params["wk"] + params["bk"]
    v = x @ params["wv"] + params["bv"]
    split = lambda t: t.reshape(B, S, num_heads, D).transpose(0, 2, 1, 3)
    qh, kh, vh = split(q), split(k), split(v)
    scores = jnp.einsum('bhqd,bhkd->bhqk', qh, kh) / math.sqrt(D)
    scores = scores + attn_mask[:, None, :, :]
    probs = jax.nn.softmax(scores, axis=-1)
    ctx = jnp.einsum('bhqk,bhkd->bhqd', probs, vh)
    ctx = ctx.transpose(0, 2, 1, 3).reshape(B, S, H)
    proj = ctx @ params["wo"] + params["bo"]
    y = proj + x
    mean = jnp.mean(y, -1, keepdims=True)
    var = jnp.mean((y - mean) ** 2, -1, keepdims=True)
    return (y - mean) / jnp.sqrt(var + ln_eps) * params["gamma"] + params["beta"]


if __name__ == "__main__":
    # Small config: batch=2, seq=16, hidden=32, heads=4 (head_dim=8).
    # tq=8 -> 2 query tiles per batch, exercising the KV-scratch reuse.
    B, S, H, NH = 2, 16, 32, 4

    key = jax.random.PRNGKey(0)
    ks = jax.random.split(key, 12)
    scale = 0.05

    params = {
        "wq": scale * jax.random.normal(ks[0], (H, H), jnp.float32),
        "bq": scale * jax.random.normal(ks[1], (1, H), jnp.float32),
        "wk": scale * jax.random.normal(ks[2], (H, H), jnp.float32),
        "bk": scale * jax.random.normal(ks[3], (1, H), jnp.float32),
        "wv": scale * jax.random.normal(ks[4], (H, H), jnp.float32),
        "bv": scale * jax.random.normal(ks[5], (1, H), jnp.float32),
        "wo": scale * jax.random.normal(ks[6], (H, H), jnp.float32),
        "bo": scale * jax.random.normal(ks[7], (1, H), jnp.float32),
        "gamma": jnp.ones((1, H), jnp.float32),
        "beta": jnp.zeros((1, H), jnp.float32),
    }

    x = jax.random.normal(ks[8], (B, S, H), jnp.float32)
    # Additive attention mask: last 3 tokens of batch 1 masked out (-1e9).
    pad = jnp.zeros((B, 1, S), jnp.float32)
    pad = pad.at[1, 0, -3:].set(-1e9)

    out = roberta_attention(x, pad, params, num_heads=NH, tq=8)
    out = jax.block_until_ready(out)

    ref = _reference(x, pad, params, num_heads=NH)
    assert out.shape == (B, S, H)
    max_err = float(jnp.max(jnp.abs(out - ref)))
    assert jnp.allclose(out, ref, atol=2e-2, rtol=2e-2), (
        f"mismatch vs reference (max abs err {max_err})")

    print("KERNEL_OK")
</pallas_src>

<mosaic_0001>
module attributes {stable_mosaic.version = 11 : i64} {
  func.func @_roberta_attention_kernel(%arg0: i32, %arg1: i32, %arg2: memref<1x16x32xf32, #tpu.memory_space<vmem>>, %arg3: memref<1x1x16xf32, #tpu.memory_space<vmem>>, %arg4: memref<32x32xbf16, #tpu.memory_space<vmem>>, %arg5: memref<1x32xf32, #tpu.memory_space<vmem>>, %arg6: memref<32x32xbf16, #tpu.memory_space<vmem>>, %arg7: memref<1x32xf32, #tpu.memory_space<vmem>>, %arg8: memref<32x32xbf16, #tpu.memory_space<vmem>>, %arg9: memref<1x32xf32, #tpu.memory_space<vmem>>, %arg10: memref<32x32xbf16, #tpu.memory_space<vmem>>, %arg11: memref<1x32xf32, #tpu.memory_space<vmem>>, %arg12: memref<1x32xf32, #tpu.memory_space<vmem>>, %arg13: memref<1x32xf32, #tpu.memory_space<vmem>>, %arg14: memref<1x8x32xf32, #tpu.memory_space<vmem>>, %arg15: memref<4x16x8xbf16, #tpu.memory_space<vmem>>, %arg16: memref<4x16x8xbf16, #tpu.memory_space<vmem>>, %arg17: memref<8x32xbf16, #tpu.memory_space<vmem>>, %arg18: memref<8x32xbf16, #tpu.memory_space<vmem>>) attributes {dimension_semantics = [#tpu.dimension_semantics<parallel>, #tpu.dimension_semantics<arbitrary>], iteration_bounds = array<i64: 2, 2>, scalar_prefetch = 0 : i64, scratch_operands = 4 : i64, tpu.core_type = #tpu.core_type<tc>, window_params = [{transform_indices = @transform_0, window_bounds = array<i64: 1, 16, 32>}, {transform_indices = @transform_1, window_bounds = array<i64: 1, 1, 16>}, {pipeline_mode = #tpu.pipeline_mode<synchronous>, transform_indices = @transform_2, window_bounds = array<i64: 32, 32>}, {pipeline_mode = #tpu.pipeline_mode<synchronous>, transform_indices = @transform_3, window_bounds = array<i64: 1, 32>}, {pipeline_mode = #tpu.pipeline_mode<synchronous>, transform_indices = @transform_4, window_bounds = array<i64: 32, 32>}, {pipeline_mode = #tpu.pipeline_mode<synchronous>, transform_indices = @transform_5, window_bounds = array<i64: 1, 32>}, {pipeline_mode = #tpu.pipeline_mode<synchronous>, transform_indices = @transform_6, window_bounds = array<i64: 32, 32>}, {pipeline_mode = #tpu.pipeline_mode<synchronous>, transform_indices = @transform_7, window_bounds = array<i64: 1, 32>}, {pipeline_mode = #tpu.pipeline_mode<synchronous>, transform_indices = @transform_8, window_bounds = array<i64: 32, 32>}, {pipeline_mode = #tpu.pipeline_mode<synchronous>, transform_indices = @transform_9, window_bounds = array<i64: 1, 32>}, {pipeline_mode = #tpu.pipeline_mode<synchronous>, transform_indices = @transform_10, window_bounds = array<i64: 1, 32>}, {pipeline_mode = #tpu.pipeline_mode<synchronous>, transform_indices = @transform_11, window_bounds = array<i64: 1, 32>}, {transform_indices = @transform_12, window_bounds = array<i64: 1, 8, 32>}]} {
    %c0_i32 = arith.constant 0 : i32
    %0 = arith.cmpi eq, %arg1, %c0_i32 : i32
    %1 = arith.extui %0 : i1 to i32
    %c0_i32_0 = arith.constant 0 : i32
    %2 = arith.cmpi ne, %1, %c0_i32_0 : i32
    scf.if %2 {
      %c0_80 = arith.constant 0 : index
      %c0_81 = arith.constant 0 : index
      %c0_82 = arith.constant 0 : index
      %136 = vector.load %arg2[%c0_80, %c0_81, %c0_82] : memref<1x16x32xf32, #tpu.memory_space<vmem>>, vector<1x16x32xf32>
      %137 = vector.shape_cast %136 : vector<1x16x32xf32> to vector<16x32xf32>
      %138 = arith.truncf %137 : vector<16x32xf32> to vector<16x32xbf16>
      %c0_83 = arith.constant 0 : index
      %c0_84 = arith.constant 0 : index
      %139 = vector.load %arg6[%c0_83, %c0_84] : memref<32x32xbf16, #tpu.memory_space<vmem>>, vector<32x32xbf16>
      %cst_85 = arith.constant dense<0.000000e+00> : vector<16x32xf32>
      %140 = tpu.matmul %138, %139, %cst_85 {dimension_numbers = #tpu.dot_dimension_numbers<[1], [0], [0], [1], [0, 0, 1, 1], [], []>} : vector<16x32xbf16>, vector<32x32xbf16>, vector<16x32xf32> -> vector<16x32xf32>
      %c0_86 = arith.constant 0 : index
      %c0_87 = arith.constant 0 : index
      %141 = vector.load %arg7[%c0_86, %c0_87] : memref<1x32xf32, #tpu.memory_space<vmem>>, vector<1x32xf32>
      %142 = vector.broadcast %141 : vector<1x32xf32> to vector<16x32xf32>
      %143 = arith.addf %140, %142 : vector<16x32xf32>
      %144 = arith.truncf %143 : vector<16x32xf32> to vector<16x32xbf16>
      %c0_88 = arith.constant 0 : index
      %c0_89 = arith.constant 0 : index
      %145 = vector.load %arg8[%c0_88, %c0_89] : memref<32x32xbf16, #tpu.memory_space<vmem>>, vector<32x32xbf16>
      %cst_90 = arith.constant dense<0.000000e+00> : vector<16x32xf32>
      %146 = tpu.matmul %138, %145, %cst_90 {dimension_numbers = #tpu.dot_dimension_numbers<[1], [0], [0], [1], [0, 0, 1, 1], [], []>} : vector<16x32xbf16>, vector<32x32xbf16>, vector<16x32xf32> -> vector<16x32xf32>
      %c0_91 = arith.constant 0 : index
      %c0_92 = arith.constant 0 : index
      %147 = vector.load %arg9[%c0_91, %c0_92] : memref<1x32xf32, #tpu.memory_space<vmem>>, vector<1x32xf32>
      %148 = vector.broadcast %147 : vector<1x32xf32> to vector<16x32xf32>
      %149 = arith.addf %146, %148 : vector<16x32xf32>
      %150 = arith.truncf %149 : vector<16x32xf32> to vector<16x32xbf16>
      %151 = vector.extract_strided_slice %144 {offsets = [0, 0], sizes = [16, 8], strides = [1, 1]} : vector<16x32xbf16> to vector<16x8xbf16>
      %c0_93 = arith.constant 0 : index
      %c0_94 = arith.constant 0 : index
      %c0_95 = arith.constant 0 : index
      %152 = vector.load %arg15[%c0_93, %c0_94, %c0_95] : memref<4x16x8xbf16, #tpu.memory_space<vmem>>, vector<1x16x8xbf16>
      %153 = vector.shape_cast %152 : vector<1x16x8xbf16> to vector<16x8xbf16>
      %154 = vector.shape_cast %151 : vector<16x8xbf16> to vector<1x16x8xbf16>
      tpu.vector_store %arg15[%c0_93, %c0_94, %c0_95], %154 {strides = array<i32>} : memref<4x16x8xbf16, #tpu.memory_space<vmem>>, vector<1x16x8xbf16>,
      %155 = vector.extract_strided_slice %150 {offsets = [0, 0], sizes = [16, 8], strides = [1, 1]} : vector<16x32xbf16> to vector<16x8xbf16>
      %c0_96 = arith.constant 0 : index
      %c0_97 = arith.constant 0 : index
      %c0_98 = arith.constant 0 : index
      %156 = vector.load %arg16[%c0_96, %c0_97, %c0_98] : memref<4x16x8xbf16, #tpu.memory_space<vmem>>, vector<1x16x8xbf16>
      %157 = vector.shape_cast %156 : vector<1x16x8xbf16> to vector<16x8xbf16>
      %158 = vector.shape_cast %155 : vector<16x8xbf16> to vector<1x16x8xbf16>
      tpu.vector_store %arg16[%c0_96, %c0_97, %c0_98], %158 {strides = array<i32>} : memref<4x16x8xbf16, #tpu.memory_space<vmem>>, vector<1x16x8xbf16>,
      %159 = vector.extract_strided_slice %144 {offsets = [0, 8], sizes = [16, 8], strides = [1, 1]} : vector<16x32xbf16> to vector<16x8xbf16>
      %c1_99 = arith.constant 1 : index
      %c0_100 = arith.constant 0 : index
      %c0_101 = arith.constant 0 : index
      %160 = vector.load %arg15[%c1_99, %c0_100, %c0_101] : memref<4x16x8xbf16, #tpu.memory_space<vmem>>, vector<1x16x8xbf16>
      %161 = vector.shape_cast %160 : vector<1x16x8xbf16> to vector<16x8xbf16>
      %162 = vector.shape_cast %159 : vector<16x8xbf16> to vector<1x16x8xbf16>
      tpu.vector_store %arg15[%c1_99, %c0_100, %c0_101], %162 {strides = array<i32>} : memref<4x16x8xbf16, #tpu.memory_space<vmem>>, vector<1x16x8xbf16>,
      %163 = vector.extract_strided_slice %150 {offsets = [0, 8], sizes = [16, 8], strides = [1, 1]} : vector<16x32xbf16> to vector<16x8xbf16>
      %c1_102 = arith.constant 1 : index
      %c0_103 = arith.constant 0 : index
      %c0_104 = arith.constant 0 : index
      %164 = vector.load %arg16[%c1_102, %c0_103, %c0_104] : memref<4x16x8xbf16, #tpu.memory_space<vmem>>, vector<1x16x8xbf16>
      %165 = vector.shape_cast %164 : vector<1x16x8xbf16> to vector<16x8xbf16>
      %166 = vector.shape_cast %163 : vector<16x8xbf16> to vector<1x16x8xbf16>
      tpu.vector_store %arg16[%c1_102, %c0_103, %c0_104], %166 {strides = array<i32>} : memref<4x16x8xbf16, #tpu.memory_space<vmem>>, vector<1x16x8xbf16>,
      %167 = vector.extract_strided_slice %144 {offsets = [0, 16], sizes = [16, 8], strides = [1, 1]} : vector<16x32xbf16> to vector<16x8xbf16>
      %c2_105 = arith.constant 2 : index
      %c0_106 = arith.constant 0 : index
      %c0_107 = arith.constant 0 : index
      %168 = vector.load %arg15[%c2_105, %c0_106, %c0_107] : memref<4x16x8xbf16, #tpu.memory_space<vmem>>, vector<1x16x8xbf16>
      %169 = vector.shape_cast %168 : vector<1x16x8xbf16> to vector<16x8xbf16>
      %170 = vector.shape_cast %167 : vector<16x8xbf16> to vector<1x16x8xbf16>
      tpu.vector_store %arg15[%c2_105, %c0_106, %c0_107], %170 {strides = array<i32>} : memref<4x16x8xbf16, #tpu.memory_space<vmem>>, vector<1x16x8xbf16>,
      %171 = vector.extract_strided_slice %150 {offsets = [0, 16], sizes = [16, 8], strides = [1, 1]} : vector<16x32xbf16> to vector<16x8xbf16>
      %c2_108 = arith.constant 2 : index
      %c0_109 = arith.constant 0 : index
      %c0_110 = arith.constant 0 : index
      %172 = vector.load %arg16[%c2_108, %c0_109, %c0_110] : memref<4x16x8xbf16, #tpu.memory_space<vmem>>, vector<1x16x8xbf16>
      %173 = vector.shape_cast %172 : vector<1x16x8xbf16> to vector<16x8xbf16>
      %174 = vector.shape_cast %171 : vector<16x8xbf16> to vector<1x16x8xbf16>
      tpu.vector_store %arg16[%c2_108, %c0_109, %c0_110], %174 {strides = array<i32>} : memref<4x16x8xbf16, #tpu.memory_space<vmem>>, vector<1x16x8xbf16>,
      %175 = vector.extract_strided_slice %144 {offsets = [0, 24], sizes = [16, 8], strides = [1, 1]} : vector<16x32xbf16> to vector<16x8xbf16>
      %c3_111 = arith.constant 3 : index
      %c0_112 = arith.constant 0 : index
      %c0_113 = arith.constant 0 : index
      %176 = vector.load %arg15[%c3_111, %c0_112, %c0_113] : memref<4x16x8xbf16, #tpu.memory_space<vmem>>, vector<1x16x8xbf16>
      %177 = vector.shape_cast %176 : vector<1x16x8xbf16> to vector<16x8xbf16>
      %178 = vector.shape_cast %175 : vector<16x8xbf16> to vector<1x16x8xbf16>
      tpu.vector_store %arg15[%c3_111, %c0_112, %c0_113], %178 {strides = array<i32>} : memref<4x16x8xbf16, #tpu.memory_space<vmem>>, vector<1x16x8xbf16>,
      %179 = vector.extract_strided_slice %150 {offsets = [0, 24], sizes = [16, 8], strides = [1, 1]} : vector<16x32xbf16> to vector<16x8xbf16>
      %c3_114 = arith.constant 3 : index
      %c0_115 = arith.constant 0 : index
      %c0_116 = arith.constant 0 : index
      %180 = vector.load %arg16[%c3_114, %c0_115, %c0_116] : memref<4x16x8xbf16, #tpu.memory_space<vmem>>, vector<1x16x8xbf16>
      %181 = vector.shape_cast %180 : vector<1x16x8xbf16> to vector<16x8xbf16>
      %182 = vector.shape_cast %179 : vector<16x8xbf16> to vector<1x16x8xbf16>
      tpu.vector_store %arg16[%c3_114, %c0_115, %c0_116], %182 {strides = array<i32>} : memref<4x16x8xbf16, #tpu.memory_space<vmem>>, vector<1x16x8xbf16>,
    } else {
    }
    %c8_i32 = arith.constant 8 : i32
    %3 = arith.muli %arg1, %c8_i32 : i32
    %4 = tpu.assume_multiple %3, 8 : i32
    %c0 = arith.constant 0 : index
    %5 = arith.index_cast %4 : i32 to index
    %c0_1 = arith.constant 0 : index
    %6 = vector.load %arg2[%c0, %5, %c0_1] : memref<1x16x32xf32, #tpu.memory_space<vmem>>, vector<1x8x32xf32>
    %7 = vector.shape_cast %6 : vector<1x8x32xf32> to vector<8x32xf32>
    %8 = arith.truncf %7 : vector<8x32xf32> to vector<8x32xbf16>
    %c0_2 = arith.constant 0 : index
    %c0_3 = arith.constant 0 : index
    %9 = vector.load %arg4[%c0_2, %c0_3] : memref<32x32xbf16, #tpu.memory_space<vmem>>, vector<32x32xbf16>
    %cst = arith.constant dense<0.000000e+00> : vector<8x32xf32>
    %10 = tpu.matmul %8, %9, %cst {dimension_numbers = #tpu.dot_dimension_numbers<[1], [0], [0], [1], [0, 0, 1, 1], [], []>} : vector<8x32xbf16>, vector<32x32xbf16>, vector<8x32xf32> -> vector<8x32xf32>
    %c0_4 = arith.constant 0 : index
    %c0_5 = arith.constant 0 : index
    %11 = vector.load %arg5[%c0_4, %c0_5] : memref<1x32xf32, #tpu.memory_space<vmem>>, vector<1x32xf32>
    %12 = vector.broadcast %11 : vector<1x32xf32> to vector<8x32xf32>
    %13 = arith.addf %10, %12 : vector<8x32xf32>
    %14 = arith.truncf %13 : vector<8x32xf32> to vector<8x32xbf16>
    %c0_6 = arith.constant 0 : index
    %c0_7 = arith.constant 0 : index
    %15 = vector.load %arg17[%c0_6, %c0_7] : memref<8x32xbf16, #tpu.memory_space<vmem>>, vector<8x32xbf16>
    tpu.vector_store %arg17[%c0_6, %c0_7], %14 {strides = array<i32>} : memref<8x32xbf16, #tpu.memory_space<vmem>>, vector<8x32xbf16>,
    %c0_8 = arith.constant 0 : index
    %c0_9 = arith.constant 0 : index
    %c0_10 = arith.constant 0 : index
    %16 = vector.load %arg3[%c0_8, %c0_9, %c0_10] : memref<1x1x16xf32, #tpu.memory_space<vmem>>, vector<1x1x16xf32>
    %17 = vector.shape_cast %16 : vector<1x1x16xf32> to vector<1x16xf32>
    %18 = vector.shape_cast %17 : vector<1x16xf32> to vector<1x16xf32>
    %19 = vector.broadcast %18 : vector<1x16xf32> to vector<8x16xf32>
    %c0_11 = arith.constant 0 : index
    %c0_12 = arith.constant 0 : index
    %20 = vector.load %arg17[%c0_11, %c0_12] : memref<8x32xbf16, #tpu.memory_space<vmem>>, vector<8x8xbf16>
    %c0_13 = arith.constant 0 : index
    %c0_14 = arith.constant 0 : index
    %c0_15 = arith.constant 0 : index
    %21 = vector.load %arg15[%c0_13, %c0_14, %c0_15] : memref<4x16x8xbf16, #tpu.memory_space<vmem>>, vector<1x16x8xbf16>
    %22 = vector.shape_cast %21 : vector<1x16x8xbf16> to vector<16x8xbf16>
    %c0_16 = arith.constant 0 : index
    %c0_17 = arith.constant 0 : index
    %c0_18 = arith.constant 0 : index
    %23 = vector.load %arg16[%c0_16, %c0_17, %c0_18] : memref<4x16x8xbf16, #tpu.memory_space<vmem>>, vector<1x16x8xbf16>
    %24 = vector.shape_cast %23 : vector<1x16x8xbf16> to vector<16x8xbf16>
    %cst_19 = arith.constant dense<0.000000e+00> : vector<8x16xf32>
    %25 = tpu.matmul %20, %22, %cst_19 {dimension_numbers = #tpu.dot_dimension_numbers<[1], [1], [0], [0], [0, 0, 1, 0], [], []>} : vector<8x8xbf16>, vector<16x8xbf16>, vector<8x16xf32> -> vector<8x16xf32>
    %26 = arith.addf %25, %19 : vector<8x16xf32>
    %cst_20 = arith.constant dense<0xFF800000> : vector<8xf32>
    %27 = vector.multi_reduction <maximumf>, %26, %cst_20 [1] : vector<8x16xf32> to vector<8xf32>
    %28 = vector.shape_cast %27 : vector<8xf32> to vector<8x1xf32>
    %29 = vector.broadcast %28 : vector<8x1xf32> to vector<8x16xf32>
    %30 = arith.subf %26, %29 : vector<8x16xf32>
    %31 = math.exp %30 : vector<8x16xf32>
    %cst_21 = arith.constant dense<0.000000e+00> : vector<8xf32>
    %32 = vector.multi_reduction <add>, %31, %cst_21 [1] : vector<8x16xf32> to vector<8xf32>
    %33 = vector.shape_cast %32 : vector<8xf32> to vector<8x1xf32>
    %34 = tpu.reciprocal %33 {approx = true} : vector<8x1xf32> -> vector<8x1xf32>
    %35 = vector.broadcast %34 : vector<8x1xf32> to vector<8x16xf32>
    %36 = arith.mulf %31, %35 : vector<8x16xf32>
    %37 = arith.truncf %36 : vector<8x16xf32> to vector<8x16xbf16>
    %cst_22 = arith.constant dense<0.000000e+00> : vector<8x8xf32>
    %38 = tpu.matmul %37, %24, %cst_22 {dimension_numbers = #tpu.dot_dimension_numbers<[1], [0], [0], [1], [0, 0, 1, 1], [], []>} : vector<8x16xbf16>, vector<16x8xbf16>, vector<8x8xf32> -> vector<8x8xf32>
    %39 = arith.truncf %38 : vector<8x8xf32> to vector<8x8xbf16>
    %c0_23 = arith.constant 0 : index
    %c0_24 = arith.constant 0 : index
    %40 = vector.load %arg18[%c0_23, %c0_24] : memref<8x32xbf16, #tpu.memory_space<vmem>>, vector<8x8xbf16>
    tpu.vector_store %arg18[%c0_23, %c0_24], %39 {strides = array<i32>} : memref<8x32xbf16, #tpu.memory_space<vmem>>, vector<8x8xbf16>,
    %c0_25 = arith.constant 0 : index
    %c8 = arith.constant 8 : index
    %41 = vector.load %arg17[%c0_25, %c8] : memref<8x32xbf16, #tpu.memory_space<vmem>>, vector<8x8xbf16>
    %c1 = arith.constant 1 : index
    %c0_26 = arith.constant 0 : index
    %c0_27 = arith.constant 0 : index
    %42 = vector.load %arg15[%c1, %c0_26, %c0_27] : memref<4x16x8xbf16, #tpu.memory_space<vmem>>, vector<1x16x8xbf16>
    %43 = vector.shape_cast %42 : vector<1x16x8xbf16> to vector<16x8xbf16>
    %c1_28 = arith.constant 1 : index
    %c0_29 = arith.constant 0 : index
    %c0_30 = arith.constant 0 : index
    %44 = vector.load %arg16[%c1_28, %c0_29, %c0_30] : memref<4x16x8xbf16, #tpu.memory_space<vmem>>, vector<1x16x8xbf16>
    %45 = vector.shape_cast %44 : vector<1x16x8xbf16> to vector<16x8xbf16>
    %cst_31 = arith.constant dense<0.000000e+00> : vector<8x16xf32>
    %46 = tpu.matmul %41, %43, %cst_31 {dimension_numbers = #tpu.dot_dimension_numbers<[1], [1], [0], [0], [0, 0, 1, 0], [], []>} : vector<8x8xbf16>, vector<16x8xbf16>, vector<8x16xf32> -> vector<8x16xf32>
    %47 = arith.addf %46, %19 : vector<8x16xf32>
    %cst_32 = arith.constant dense<0xFF800000> : vector<8xf32>
    %48 = vector.multi_reduction <maximumf>, %47, %cst_32 [1] : vector<8x16xf32> to vector<8xf32>
    %49 = vector.shape_cast %48 : vector<8xf32> to vector<8x1xf32>
    %50 = vector.broadcast %49 : vector<8x1xf32> to vector<8x16xf32>
    %51 = arith.subf %47, %50 : vector<8x16xf32>
    %52 = math.exp %51 : vector<8x16xf32>
    %cst_33 = arith.constant dense<0.000000e+00> : vector<8xf32>
    %53 = vector.multi_reduction <add>, %52, %cst_33 [1] : vector<8x16xf32> to vector<8xf32>
    %54 = vector.shape_cast %53 : vector<8xf32> to vector<8x1xf32>
    %55 = tpu.reciprocal %54 {approx = true} : vector<8x1xf32> -> vector<8x1xf32>
    %56 = vector.broadcast %55 : vector<8x1xf32> to vector<8x16xf32>
    %57 = arith.mulf %52, %56 : vector<8x16xf32>
    %58 = arith.truncf %57 : vector<8x16xf32> to vector<8x16xbf16>
    %cst_34 = arith.constant dense<0.000000e+00> : vector<8x8xf32>
    %59 = tpu.matmul %58, %45, %cst_34 {dimension_numbers = #tpu.dot_dimension_numbers<[1], [0], [0], [1], [0, 0, 1, 1], [], []>} : vector<8x16xbf16>, vector<16x8xbf16>, vector<8x8xf32> -> vector<8x8xf32>
    %60 = arith.truncf %59 : vector<8x8xf32> to vector<8x8xbf16>
    %c0_35 = arith.constant 0 : index
    %c8_36 = arith.constant 8 : index
    %61 = vector.load %arg18[%c0_35, %c8_36] : memref<8x32xbf16, #tpu.memory_space<vmem>>, vector<8x8xbf16>
    tpu.vector_store %arg18[%c0_35, %c8_36], %60 {strides = array<i32>} : memref<8x32xbf16, #tpu.memory_space<vmem>>, vector<8x8xbf16>,
    %c0_37 = arith.constant 0 : index
    %c16 = arith.constant 16 : index
    %62 = vector.load %arg17[%c0_37, %c16] : memref<8x32xbf16, #tpu.memory_space<vmem>>, vector<8x8xbf16>
    %c2 = arith.constant 2 : index
    %c0_38 = arith.constant 0 : index
    %c0_39 = arith.constant 0 : index
    %63 = vector.load %arg15[%c2, %c0_38, %c0_39] : memref<4x16x8xbf16, #tpu.memory_space<vmem>>, vector<1x16x8xbf16>
    %64 = vector.shape_cast %63 : vector<1x16x8xbf16> to vector<16x8xbf16>
    %c2_40 = arith.constant 2 : index
    %c0_41 = arith.constant 0 : index
    %c0_42 = arith.constant 0 : index
    %65 = vector.load %arg16[%c2_40, %c0_41, %c0_42] : memref<4x16x8xbf16, #tpu.memory_space<vmem>>, vector<1x16x8xbf16>
    %66 = vector.shape_cast %65 : vector<1x16x8xbf16> to vector<16x8xbf16>
    %cst_43 = arith.constant dense<0.000000e+00> : vector<8x16xf32>
    %67 = tpu.matmul %62, %64, %cst_43 {dimension_numbers = #tpu.dot_dimension_numbers<[1], [1], [0], [0], [0, 0, 1, 0], [], []>} : vector<8x8xbf16>, vector<16x8xbf16>, vector<8x16xf32> -> vector<8x16xf32>
    %68 = arith.addf %67, %19 : vector<8x16xf32>
    %cst_44 = arith.constant dense<0xFF800000> : vector<8xf32>
    %69 = vector.multi_reduction <maximumf>, %68, %cst_44 [1] : vector<8x16xf32> to vector<8xf32>
    %70 = vector.shape_cast %69 : vector<8xf32> to vector<8x1xf32>
    %71 = vector.broadcast %70 : vector<8x1xf32> to vector<8x16xf32>
    %72 = arith.subf %68, %71 : vector<8x16xf32>
    %73 = math.exp %72 : vector<8x16xf32>
    %cst_45 = arith.constant dense<0.000000e+00> : vector<8xf32>
    %74 = vector.multi_reduction <add>, %73, %cst_45 [1] : vector<8x16xf32> to vector<8xf32>
    %75 = vector.shape_cast %74 : vector<8xf32> to vector<8x1xf32>
    %76 = tpu.reciprocal %75 {approx = true} : vector<8x1xf32> -> vector<8x1xf32>
    %77 = vector.broadcast %76 : vector<8x1xf32> to vector<8x16xf32>
    %78 = arith.mulf %73, %77 : vector<8x16xf32>
    %79 = arith.truncf %78 : vector<8x16xf32> to vector<8x16xbf16>
    %cst_46 = arith.constant dense<0.000000e+00> : vector<8x8xf32>
    %80 = tpu.matmul %79, %66, %cst_46 {dimension_numbers = #tpu.dot_dimension_numbers<[1], [0], [0], [1], [0, 0, 1, 1], [], []>} : vector<8x16xbf16>, vector<16x8xbf16>, vector<8x8xf32> -> vector<8x8xf32>
    %81 = arith.truncf %80 : vector<8x8xf32> to vector<8x8xbf16>
    %c0_47 = arith.constant 0 : index
    %c16_48 = arith.constant 16 : index
    %82 = vector.load %arg18[%c0_47, %c16_48] : memref<8x32xbf16, #tpu.memory_space<vmem>>, vector<8x8xbf16>
    tpu.vector_store %arg18[%c0_47, %c16_48], %81 {strides = array<i32>} : memref<8x32xbf16, #tpu.memory_space<vmem>>, vector<8x8xbf16>,
    %c0_49 = arith.constant 0 : index
    %c24 = arith.constant 24 : index
    %83 = vector.load %arg17[%c0_49, %c24] : memref<8x32xbf16, #tpu.memory_space<vmem>>, vector<8x8xbf16>
    %c3 = arith.constant 3 : index
    %c0_50 = arith.constant 0 : index
    %c0_51 = arith.constant 0 : index
    %84 = vector.load %arg15[%c3, %c0_50, %c0_51] : memref<4x16x8xbf16, #tpu.memory_space<vmem>>, vector<1x16x8xbf16>
    %85 = vector.shape_cast %84 : vector<1x16x8xbf16> to vector<16x8xbf16>
    %c3_52 = arith.constant 3 : index
    %c0_53 = arith.constant 0 : index
    %c0_54 = arith.constant 0 : index
    %86 = vector.load %arg16[%c3_52, %c0_53, %c0_54] : memref<4x16x8xbf16, #tpu.memory_space<vmem>>, vector<1x16x8xbf16>
    %87 = vector.shape_cast %86 : vector<1x16x8xbf16> to vector<16x8xbf16>
    %cst_55 = arith.constant dense<0.000000e+00> : vector<8x16xf32>
    %88 = tpu.matmul %83, %85, %cst_55 {dimension_numbers = #tpu.dot_dimension_numbers<[1], [1], [0], [0], [0, 0, 1, 0], [], []>} : vector<8x8xbf16>, vector<16x8xbf16>, vector<8x16xf32> -> vector<8x16xf32>
    %89 = arith.addf %88, %19 : vector<8x16xf32>
    %cst_56 = arith.constant dense<0xFF800000> : vector<8xf32>
    %90 = vector.multi_reduction <maximumf>, %89, %cst_56 [1] : vector<8x16xf32> to vector<8xf32>
    %91 = vector.shape_cast %90 : vector<8xf32> to vector<8x1xf32>
    %92 = vector.broadcast %91 : vector<8x1xf32> to vector<8x16xf32>
    %93 = arith.subf %89, %92 : vector<8x16xf32>
    %94 = math.exp %93 : vector<8x16xf32>
    %cst_57 = arith.constant dense<0.000000e+00> : vector<8xf32>
    %95 = vector.multi_reduction <add>, %94, %cst_57 [1] : vector<8x16xf32> to vector<8xf32>
    %96 = vector.shape_cast %95 : vector<8xf32> to vector<8x1xf32>
    %97 = tpu.reciprocal %96 {approx = true} : vector<8x1xf32> -> vector<8x1xf32>
    %98 = vector.broadcast %97 : vector<8x1xf32> to vector<8x16xf32>
    %99 = arith.mulf %94, %98 : vector<8x16xf32>
    %100 = arith.truncf %99 : vector<8x16xf32> to vector<8x16xbf16>
    %cst_58 = arith.constant dense<0.000000e+00> : vector<8x8xf32>
    %101 = tpu.matmul %100, %87, %cst_58 {dimension_numbers = #tpu.dot_dimension_numbers<[1], [0], [0], [1], [0, 0, 1, 1], [], []>} : vector<8x16xbf16>, vector<16x8xbf16>, vector<8x8xf32> -> vector<8x8xf32>
    %102 = arith.truncf %101 : vector<8x8xf32> to vector<8x8xbf16>
    %c0_59 = arith.constant 0 : index
    %c24_60 = arith.constant 24 : index
    %103 = vector.load %arg18[%c0_59, %c24_60] : memref<8x32xbf16, #tpu.memory_space<vmem>>, vector<8x8xbf16>
    tpu.vector_store %arg18[%c0_59, %c24_60], %102 {strides = array<i32>} : memref<8x32xbf16, #tpu.memory_space<vmem>>, vector<8x8xbf16>,
    %c0_61 = arith.constant 0 : index
    %c0_62 = arith.constant 0 : index
    %104 = vector.load %arg18[%c0_61, %c0_62] : memref<8x32xbf16, #tpu.memory_space<vmem>>, vector<8x32xbf16>
    %c0_63 = arith.constant 0 : index
    %c0_64 = arith.constant 0 : index
    %105 = vector.load %arg10[%c0_63, %c0_64] : memref<32x32xbf16, #tpu.memory_space<vmem>>, vector<32x32xbf16>
    %cst_65 = arith.constant dense<0.000000e+00> : vector<8x32xf32>
    %106 = tpu.matmul %104, %105, %cst_65 {dimension_numbers = #tpu.dot_dimension_numbers<[1], [0], [0], [1], [0, 0, 1, 1], [], []>} : vector<8x32xbf16>, vector<32x32xbf16>, vector<8x32xf32> -> vector<8x32xf32>
    %c0_66 = arith.constant 0 : index
    %c0_67 = arith.constant 0 : index
    %107 = vector.load %arg11[%c0_66, %c0_67] : memref<1x32xf32, #tpu.memory_space<vmem>>, vector<1x32xf32>
    %108 = vector.broadcast %107 : vector<1x32xf32> to vector<8x32xf32>
    %109 = arith.addf %106, %108 : vector<8x32xf32>
    %110 = arith.addf %109, %7 : vector<8x32xf32>
    %cst_68 = arith.constant dense<0.000000e+00> : vector<8xf32>
    %111 = vector.multi_reduction <add>, %110, %cst_68 [1] : vector<8x32xf32> to vector<8xf32>
    %112 = vector.shape_cast %111 : vector<8xf32> to vector<8x1xf32>
    %cst_69 = arith.constant 3.200000e+01 : f32
    %113 = vector.broadcast %cst_69 : f32 to vector<8x1xf32>
    %114 = arith.divf %112, %113 : vector<8x1xf32>
    %115 = vector.broadcast %114 : vector<8x1xf32> to vector<8x32xf32>
    %116 = arith.subf %110, %115 : vector<8x32xf32>
    %117 = arith.mulf %116, %116 : vector<8x32xf32>
    %cst_70 = arith.constant dense<0.000000e+00> : vector<8xf32>
    %118 = vector.multi_reduction <add>, %117, %cst_70 [1] : vector<8x32xf32> to vector<8xf32>
    %119 = vector.shape_cast %118 : vector<8xf32> to vector<8x1xf32>
    %cst_71 = arith.constant 3.200000e+01 : f32
    %120 = vector.broadcast %cst_71 : f32 to vector<8x1xf32>
    %121 = arith.divf %119, %120 : vector<8x1xf32>
    %cst_72 = arith.constant 9.99999974E-6 : f32
    %122 = vector.broadcast %cst_72 : f32 to vector<8x1xf32>
    %123 = arith.addf %121, %122 : vector<8x1xf32>
    %124 = math.rsqrt %123 : vector<8x1xf32>
    %125 = vector.broadcast %124 : vector<8x1xf32> to vector<8x32xf32>
    %126 = arith.mulf %116, %125 : vector<8x32xf32>
    %c0_73 = arith.constant 0 : index
    %c0_74 = arith.constant 0 : index
    %127 = vector.load %arg12[%c0_73, %c0_74] : memref<1x32xf32, #tpu.memory_space<vmem>>, vector<1x32xf32>
    %128 = vector.broadcast %127 : vector<1x32xf32> to vector<8x32xf32>
    %129 = arith.mulf %126, %128 : vector<8x32xf32>
    %c0_75 = arith.constant 0 : index
    %c0_76 = arith.constant 0 : index
    %130 = vector.load %arg13[%c0_75, %c0_76] : memref<1x32xf32, #tpu.memory_space<vmem>>, vector<1x32xf32>
    %131 = vector.broadcast %130 : vector<1x32xf32> to vector<8x32xf32>
    %132 = arith.addf %129, %131 : vector<8x32xf32>
    %c0_77 = arith.constant 0 : index
    %c0_78 = arith.constant 0 : index
    %c0_79 = arith.constant 0 : index
    %133 = vector.load %arg14[%c0_77, %c0_78, %c0_79] : memref<1x8x32xf32, #tpu.memory_space<vmem>>, vector<1x8x32xf32>
    %134 = vector.shape_cast %133 : vector<1x8x32xf32> to vector<8x32xf32>
    %135 = vector.shape_cast %132 : vector<8x32xf32> to vector<1x8x32xf32>
    tpu.vector_store %arg14[%c0_77, %c0_78, %c0_79], %135 {strides = array<i32>} : memref<1x8x32xf32, #tpu.memory_space<vmem>>, vector<1x8x32xf32>,
    return
  }
  func.func @transform_0(%arg0: i32, %arg1: i32) -> (i32, i32, i32) {
    %c0_i32 = arith.constant 0 : i32
    %c0_i32_0 = arith.constant 0 : i32
    %c0_i32_1 = arith.constant 0 : i32
    return %arg0, %c0_i32, %c0_i32_0 : i32, i32, i32
  }
  func.func @transform_1(%arg0: i32, %arg1: i32) -> (i32, i32, i32) {
    %c0_i32 = arith.constant 0 : i32
    %c0_i32_0 = arith.constant 0 : i32
    %c0_i32_1 = arith.constant 0 : i32
    return %arg0, %c0_i32, %c0_i32_0 : i32, i32, i32
  }
  func.func @transform_2(%arg0: i32, %arg1: i32) -> (i32, i32) {
    %c0_i32 = arith.constant 0 : i32
    %c0_i32_0 = arith.constant 0 : i32
    %c0_i32_1 = arith.constant 0 : i32
    return %c0_i32, %c0_i32_0 : i32, i32
  }
  func.func @transform_3(%arg0: i32, %arg1: i32) -> (i32, i32) {
    %c0_i32 = arith.constant 0 : i32
    %c0_i32_0 = arith.constant 0 : i32
    %c0_i32_1 = arith.constant 0 : i32
    return %c0_i32, %c0_i32_0 : i32, i32
  }
  func.func @transform_4(%arg0: i32, %arg1: i32) -> (i32, i32) {
    %c0_i32 = arith.constant 0 : i32
    %c0_i32_0 = arith.constant 0 : i32
    %c0_i32_1 = arith.constant 0 : i32
    return %c0_i32, %c0_i32_0 : i32, i32
  }
  func.func @transform_5(%arg0: i32, %arg1: i32) -> (i32, i32) {
    %c0_i32 = arith.constant 0 : i32
    %c0_i32_0 = arith.constant 0 : i32
    %c0_i32_1 = arith.constant 0 : i32
    return %c0_i32, %c0_i32_0 : i32, i32
  }
  func.func @transform_6(%arg0: i32, %arg1: i32) -> (i32, i32) {
    %c0_i32 = arith.constant 0 : i32
    %c0_i32_0 = arith.constant 0 : i32
    %c0_i32_1 = arith.constant 0 : i32
    return %c0_i32, %c0_i32_0 : i32, i32
  }
  func.func @transform_7(%arg0: i32, %arg1: i32) -> (i32, i32) {
    %c0_i32 = arith.constant 0 : i32
    %c0_i32_0 = arith.constant 0 : i32
    %c0_i32_1 = arith.constant 0 : i32
    return %c0_i32, %c0_i32_0 : i32, i32
  }
  func.func @transform_8(%arg0: i32, %arg1: i32) -> (i32, i32) {
    %c0_i32 = arith.constant 0 : i32
    %c0_i32_0 = arith.constant 0 : i32
    %c0_i32_1 = arith.constant 0 : i32
    return %c0_i32, %c0_i32_0 : i32, i32
  }
  func.func @transform_9(%arg0: i32, %arg1: i32) -> (i32, i32) {
    %c0_i32 = arith.constant 0 : i32
    %c0_i32_0 = arith.constant 0 : i32
    %c0_i32_1 = arith.constant 0 : i32
    return %c0_i32, %c0_i32_0 : i32, i32
  }
  func.func @transform_10(%arg0: i32, %arg1: i32) -> (i32, i32) {
    %c0_i32 = arith.constant 0 : i32
    %c0_i32_0 = arith.constant 0 : i32
    %c0_i32_1 = arith.constant 0 : i32
    return %c0_i32, %c0_i32_0 : i32, i32
  }
  func.func @transform_11(%arg0: i32, %arg1: i32) -> (i32, i32) {
    %c0_i32 = arith.constant 0 : i32
    %c0_i32_0 = arith.constant 0 : i32
    %c0_i32_1 = arith.constant 0 : i32
    return %c0_i32, %c0_i32_0 : i32, i32
  }
  func.func @transform_12(%arg0: i32, %arg1: i32) -> (i32, i32, i32) {
    %c0_i32 = arith.constant 0 : i32
    %c0_i32_0 = arith.constant 0 : i32
    return %arg0, %arg1, %c0_i32 : i32, i32, i32
  }
}

</mosaic_0001>

<bundles_post_ra>
// kernel: tpu_custom_call.1
= control target key start
LH: loop header
LB: loop body
LE: loop exit
PB: predicated region body
PF: predicated region fallthrough
CT: control target
= control target key end

     0   :  { %s2312_s0 = inlined_call_operand.hbm [shape: f32[2,16,32], index: 0, kind: input, shape index: {}]   ;;  %s2313_s1 = inlined_call_operand.hbm [shape: f32[2,1,16], index: 1, kind: input, shape index: {}]   ;;  %s2314_s2 = inlined_call_operand.hbm [shape: bf16[32,32], index: 2, kind: input, shape index: {}]   ;;  %s2315_s3 = inlined_call_operand.vmem [shape: f32[1,32], index: 3, kind: input, shape index: {}]   ;;  %s2316_s4 = inlined_call_operand.hbm [shape: bf16[32,32], index: 4, kind: input, shape index: {}]   ;;  %s2317_s5 = inlined_call_operand.vmem [shape: f32[1,32], index: 5, kind: input, shape index: {}]   ;;  %s2318_s6 = inlined_call_operand.hbm [shape: bf16[32,32], index: 6, kind: input, shape index: {}]   ;;  %s2319_s7 = inlined_call_operand.vmem [shape: f32[1,32], index: 7, kind: input, shape index: {}]   ;;  %s2320_s8 = inlined_call_operand.hbm [shape: bf16[32,32], index: 8, kind: input, shape index: {}]   ;;  %s2321_s9 = inlined_call_operand.vmem [shape: f32[1,32], index: 9, kind: input, shape index: {}]   ;;  %s2322_s10 = inlined_call_operand.vmem [shape: f32[1,32], index: 10, kind: input, shape index: {}]   ;;  %s2323_s11 = inlined_call_operand.vmem [shape: f32[1,32], index: 11, kind: input, shape index: {}]   ;;  %s2324_s12 = inlined_call_operand.hbm [shape: f32[2,16,32], index: 12, kind: output, shape index: {}]  }
   0x1   :  { %2333 = sst [smem:[#allocation31_spill]] %s2312_s0 }
   0x2   :  { %2334 = sst [smem:[#allocation32_spill]] %s2314_s2 }
   0x3   :  { %2335 = sst [smem:[#allocation33_spill]] %s2315_s3 }
   0x4   :  { %2336 = sst [smem:[#allocation34_spill]] %s2316_s4 }
   0x5   :  { %2337 = sst [smem:[#allocation35_spill]] %s2318_s6 }
   0x6   :  { %2338 = sst [smem:[#allocation36_spill]] %s2319_s7 }
   0x7   :  { %2339 = sst [smem:[#allocation37_spill]] %s2320_s8 }
   0x8   :  { %2340 = sst [smem:[#allocation38_spill]] %s2321_s9 }
   0x9   :  { %2341 = sst [smem:[#allocation39_spill]] %s2322_s10 }
   0xa   :  { %2342 = sst [smem:[#allocation40_spill]] %s2323_s11 }
   0xb   :  { %2343 = sst [smem:[#allocation41_spill]] %s2324_s12 }
   0xc   :  { %17 = vsyncpa [#allocation7], 0 }
   0xd   :  { %19 = vsyncpa [#allocation7 + $0x1], 0 }
   0xe   :  { %20 = vsyncpa [#allocation10], 0 }
   0xf   :  { %22 = vsyncpa [#allocation10 + $0x1], 0 }
  0x10   :  { %23 = vsyncpa [#allocation13], 0 }
  0x11   :  { %24 = vsyncpa [#allocation16], 0 }
  0x12   :  { %25 = vsyncpa [#allocation8], 0 }
  0x13   :  { %27 = vsyncpa [#allocation8 + $0x1], 0  ;;  %s1991_s21 = smov 0   ;;  %s1993_s22 = smov 0  }
  0x14   :  { %s1995_s23 = smov 0   ;;  %s1997_s24 = smov 0  }
  0x15   :  { %s1999_s25 = smov 0   ;;  %s2001_s26 = smov 0  }
  0x16   :  { %s2003_s27 = smov 0   ;;  %s2005_s28 = smov 0  }
  0x17   :  { %s2007_s29 = smov 0   ;;  %s2009_s30 = smov 0  }
  0x18   :  { %s2011_s13 = smov 0  }
  0x19 LB: > { %2344 = sst [smem:[#allocation24_spill]] %s1866_s21  ;;  %s2045_s14 = sadd.s32 4294967295, %s1906_s13   ;;  %s1906_s13 = sphi %s2011_s13, %s33_s13   ;;  %s1902_s30 = sphi %s2009_s30, %s2383_s30   ;;  %s1898_s29 = sphi %s2007_s29, %s2374_s29   ;;  %s1894_s28 = sphi %s2005_s28, %s2382_s28   ;;  %s1890_s27 = sphi %s2003_s27, %s2373_s27   ;;  %s1886_s26 = sphi %s2001_s26, %s2381_s26   ;;  %s1882_s25 = sphi %s1999_s25, %s2380_s25   ;;  %s1878_s24 = sphi %s1997_s24, %s2379_s24   ;;  %s1874_s23 = sphi %s1995_s23, %s2378_s23   ;;  %s1870_s22 = sphi %s1993_s22, %s2377_s22   ;;  %s1866_s21 = sphi %s1991_s21, %s2376_s21  }
  0x1a   : > { %2345 = sst [smem:[#allocation25_spill]] %s1894_s28  ;;  %s1282_s15 = sadd.s32 4294967294, %s1906_s13  }
  0x1b   : > { %2346 = sst [smem:[#allocation26_spill]] %s1898_s29  ;;  %p65_p0 = scmp.ne.s32.totalorder %s1882_s25, %s1878_s24 }
  0x1c   : > { %p66_p1 = scmp.eq.s32.totalorder %s2045_s14, 0  ;;  %p326_p2 = scmp.ne.s32.totalorder %s1874_s23, %s1870_s22 }
  0x1d   : > { %p327_p4 = scmp.eq.s32.totalorder %s2045_s14, 3  ;;  %p332_p5 = scmp.ne.s32.totalorder %s1870_s22, %s1866_s21 }
  0x1e   : > { %p2055_p3 = por %p66_p1, %p65_p0  ;;  %p333_p6 = scmp.eq.s32.totalorder %s1282_s15, 3 }
  0x1f   : > { %p2062_p7 = por %p327_p4, %p326_p2  ;;  %p1283_p8 = scmp.ge.s32.totalorder %s1906_s13, 1 }
  0x20   : > { %p2067_p9 = por %p333_p6, %p332_p5  ;;  %p340_p10 = scmp.lt.s32.totalorder %s1906_s13, 5 }
  0x21   : > { %s2348_s18 = scalar_select %p2062_p7, 1, 0 }
  0x22   : > { %s2350_s19 = scalar_select %p2067_p9, 1, 0 }
  0x23   : > { %2349 = sst [smem:[#allocation27_spill]] %s2348_s18  ;;  %p2075_p11 = pnand %p1283_p8, %p340_p10 }
  0x24   : > { %2351 = sst [smem:[#allocation28_spill]] %s2350_s19  ;;  %s1908_s15 = smov [#allocation11]  }
  0x25   : > { %s2352_s2 = sld [smem:[#allocation32_spill]]  ;;  %p1421_p12 = pneg %p2075_p11 }
  0x26   : > { %s353_s21 = sshll.u32 %s1908_s15, 4  ;;  %s2355_s4 = sld [smem:[#allocation34_spill]]  ;;  %s354_s21 = int_to_ptr.vmem [resolvable:$true] %s353_s21 }
  0x27   : > { %p2083_p13 = pnand %p1421_p12, %p66_p1  ;;  %s1909_s24 = smov 64  }
  0x28   : > { %s1911_s15 = smov [#allocation12]   ;;  %s2356_s6 = sld [smem:[#allocation35_spill]] }
  0x29   : > { %s370_s10 = sshll.u32 %s1911_s15, 4  ;;  %s2357_s8 = sld [smem:[#allocation37_spill]]  ;;  %s371_s10 = int_to_ptr.vmem [resolvable:$true] %s370_s10 }
  0x2a   : > { %s1913_s9 = smov [#allocation15]   ;;  %s52_s12 = sadd.s32 1, %s1886_s26 }
  0x2b   : > { %s351_s16 = sshll.u32 %s2352_s2, 4  ;;  %s1910_s2 = smov 4   ;;  %s352_s16 = int_to_ptr.hbm [resolvable:$true] %s351_s16 }
  0x2c   : > { %s368_s20 = sshll.u32 %s2355_s4, 4  ;;  %s404_s28 = sshll.u32 %s1913_s9, 4  ;;  %s369_s20 = int_to_ptr.hbm [resolvable:$true] %s368_s20  ;;  %s405_s28 = int_to_ptr.vmem [resolvable:$true] %s404_s28 }
  0x2d   : > { %1424 = dma.hbm_to_vmem [thread:$0]  (!%p2083_p13), %s352_s16, 256, %s354_s21, [#allocation10], %s1909_s24, %s1909_s24, %s1910_s2  }
  0x2e   : > { %s385_s3 = sshll.u32 %s2356_s6, 4  ;;  %s1912_s16 = smov [#allocation14]   ;;  %s386_s3 = int_to_ptr.hbm [resolvable:$true] %s385_s3 }
  0x2f   : > { %1427 = dma.hbm_to_vmem [thread:$0]  (!%p2083_p13), %s369_s20, 256, %s371_s10, [#allocation13], %s1909_s24, %s1909_s24, %s1910_s2  }
  0x30   : > { %s402_s21 = sshll.u32 %s2357_s8, 4  ;;  %s387_s15 = sshll.u32 %s1912_s16, 4  ;;  %s403_s21 = int_to_ptr.hbm [resolvable:$true] %s402_s21  ;;  %s388_s15 = int_to_ptr.vmem [resolvable:$true] %s387_s15 }
  0x31   : > { %1430 = dma.hbm_to_vmem [thread:$0]  (!%p2083_p13), %s386_s3, 256, %s388_s15, [#allocation13], %s1909_s24, %s1909_s24, %s1910_s2  }
  0x32   : > { %1433 = dma.hbm_to_vmem [thread:$0]  (!%p2083_p13), %s403_s21, 256, %s405_s28, [#allocation16], %s1909_s24, %s1909_s24, %s1910_s2  }
  0x33   : > { %s42_s10 = sadd.s32 1, %s1898_s29  ;;  %s45_s20 = sadd.s32 1, %s1902_s30 }
  0x34   : > { %p43_p0 = scmp.ge.s32.totalorder %s42_s10, 2  ;;  %p59_p2 = scmp.ne.s32.totalorder %s1886_s26, %s1882_s25 }
  0x35   : > { %p60_p4 = scmp.eq.s32.totalorder %s1906_s13, 0  ;;  %p1449_p8 = scmp.lt.s32.totalorder %s1906_s13, 4 }
  0x36   : > { %s2385_s10 = smov (%p43_p0, %s42_s10), 0  ;;  %s2387_s20 = smov (!%p43_p0, %s45_s20), %s1902_s30 }
  0x37   : > { %2358 = sst [smem:[#allocation29_spill]] %s2385_s10  ;;  %p2113_p5 = por %p60_p4, %p59_p2 }
  0x38   : > { %s312_s18 = ssub.s32 %s1898_s29, %s2385_s10  ;;  %p47_p6 = scmp.ge.s32.totalorder %s2387_s20, 2 }
  0x39   : > { %s427_s2 = sand.u32 1, %s1886_s26   ;;  %s1382_s24 = sshll.u32 %s1902_s30, 4 }
  0x3a   : > { %s2389_s20 = smov (%p47_p6, %s2387_s20), 0  ;;  %s1289_s19 = sshll.u32 %s427_s2, 4 }
  0x3b   : > { %2360 = sst [smem:[#allocation30_spill]] %s2389_s20  ;;  %s49_s21 = ssub.s32 %s1902_s30, %s2389_s20 }
  0x3c   : > { %p50_p10 = scmp.eq.s32.totalorder %s49_s21, 0  ;;  %s313_s16 = sor.u32 %s312_s18, %s49_s21 }
  0x3d   : > { %p314_p12 = scmp.eq.s32.totalorder %s313_s16, 0  ;;  %s2361_s0 = sld [smem:[#allocation31_spill]] }
  0x3e   : > { %s2130_s4 = scalar_select %p50_p10, %s1886_s26, %s52_s12  }
  0x3f   : > { %s2362_s6 = sadd.s32 1, %s1874_s23  ;;  %s431_s29 = scalar_lea.vmem [#allocation6], %s1289_s19 }
  0x40   : > { %s2135_s8 = scalar_select %p314_p12, %s1874_s23, %s2362_s6  }
  0x41   : > { %s439_s7 = sshll.u32 %s431_s29, 4  ;;  %p1435_p13 = pnand %p1449_p8, %p2113_p5  ;;  %s440_s7 = int_to_ptr.vmem [resolvable:$true] %s439_s7 }
  0x42   : > { %s449_s18 = sand.u32 1, %s1906_s13   ;;  %s428_s21 = scalar_lea.sflag [#allocation7], %s427_s2 }
  0x43   : > { %s436_s28 = scalar_lea.hbm %s2361_s0, %s1382_s24  ;;  %s1914_s16 = smov 128  }
  0x44   : > { %s437_s10 = sshll.u32 %s436_s28, 4  ;;  %s1915_s20 = smov 8   ;;  %s438_s10 = int_to_ptr.hbm [resolvable:$true] %s437_s10 }
  0x45   : > { %1437 = dma.hbm_to_vmem [thread:$0]  (!%p1435_p13), %s438_s10, 256, %s440_s7, %s428_s21, %s1914_s16, %s1914_s16, %s1915_s20  }
  0x46   : > { %s455_s12 = scalar_lea.hbm %s2313_s1, %s1902_s30  ;;  %s452_s6 = scalar_lea.vmem [#allocation9], %s427_s2 }
  0x47   : > { %s457_s9 = sshll.u32 %s455_s12, 4  ;;  %s459_s0 = sshll.u32 %s452_s6, 4  ;;  %s458_s9 = int_to_ptr.hbm [resolvable:$true] %s457_s9  ;;  %s460_s0 = int_to_ptr.vmem [resolvable:$true] %s459_s0 }
  0x48   : > { %s450_s29 = scalar_lea.sflag [#allocation10], %s449_s18  ;;  %468 = sbr.rel (%p2075_p11) target bundleno = 1707 (0x6ab), region = 68 }
  0x49   : > { %1440 = dma.hbm_to_vmem [thread:$0]  (!%p1435_p13), %s458_s9, 16, %s460_s0, %s450_s29  }
  0x4a   : > { %s2149_s3 = sand.u32 (!%p2075_p11), 1, %s1882_s25  }
  0x4b   : > { %s1293_s7 = sshll.u32 (!%p2075_p11), %s2149_s3, 4  ;;  %s471_s10 = scalar_lea.sflag (!%p2075_p11), [#allocation7], %s2149_s3 }
  0x4c   : > { %s2153_s20 = scalar_lea.vmem (!%p2075_p11), [#allocation6], %s1293_s7 }
  0x4d   : > { %1841 = dma.done.wait (%p2055_p3), %s471_s10, 256  }
  0x4e   : > { %1843 = vsyncadd (%p2055_p3), %s471_s10, 4294967040  ;;  %s480_s0 = sand.u32 1, %s2045_s14   ;;  %s483_s2 = scalar_lea.vmem [#allocation9], %s2149_s3 }
  0x4f   : > { %s481_s11 = scalar_lea.sflag [#allocation10], %s480_s0 }
  0x50   : > { %1845 = dma.done.wait (%p2055_p3), %s481_s11, 16  }
  0x51   : > { %1847 = vsyncadd (%p2055_p3), %s481_s11, 4294967280 }
  0x52   : > { %1849 = dma.done.wait (%p66_p1), [#allocation10], 256  }
  0x53   : > { %1851 = vsyncadd (%p66_p1), [#allocation10], 4294967040 }
  0x54   : > { %1853 = dma.done.wait (%p66_p1), [#allocation13], 512  }
  0x55   : > { %1855 = vsyncadd (%p66_p1), [#allocation13], 4294966784 }
  0x56   : > { %1857 = dma.done.wait (%p66_p1), [#allocation16], 256  }
  0x57   : > { %1859 = vsyncadd (%p66_p1), [#allocation16], 4294967040  ;;  %s546_s17 = sand.u32 1, %s1870_s22   ;;  %p1299_p3 = scmp.ne.s32.totalorder %s1890_s27, 0 }
  0x58   : > { %s2180_s19 = sshll.u32 %s546_s17, 3  ;;  %s2363_s15 = sld [smem:[#allocation36_spill]] (!%p1299_p3) }
  0x59   : > { %s548_s28 = scalar_lea.vmem [#allocation17], %s2180_s19  ;;  %553 = sbr.rel (%p1299_p3) target bundleno = 373 (0x175), region = 96 }
  0x5a   : > { %s1916_s24 = smov (!%p1299_p3), 120   ;;  %s1917_s12 = smov (!%p1299_p3), 112  }
  0x5b   : > { %s1918_s9 = smov (!%p1299_p3), 104  }
  0x5e   : > { %v1384_v0 = vld [vmem:[#allocation12 + $0x8] sm:$0xff]  ;;  %v1386_v1 = vld [vmem:[#allocation14 + $0x8] sm:$0xff]  ;;  %v1383_v2 = vld [vmem:[#allocation12] sm:$0xff]  ;;  %vm577_vm0 = vcmask 261120   ;;  %vm633_vm1 = vcmask 60416  }
  0x5f   : > { %v1385_v3 = vld [vmem:[#allocation14] sm:$0xff]  ;;  %587 = vmatpush.bf16.msra.mxu0 %v1384_v0  ;;  %623 = vmatpush.bf16.msra.mxu1 %v1386_v1  ;;  %v1561_v7 = vld [vmem:[%s2317_s5] ss:$0 sm:$0xff] }
  0x60   : > { %v554_v4 = vld [vmem:[%s2153_s20] sm:$0xff]  ;;  %v555_v5 = vld [vmem:[%s2153_s20 + $0x8] sm:$0xff] }
  0x61   : > { %v556_v6 = vpack.c.bf16 %v555_v5, %v554_v4  ;;  %v1562_v8 = vld [vmem:[%s2363_s15] ss:$0 sm:$0xff] }
  0x63   : > { %588 = vmatpush.bf16.msra.mxu0 %v1383_v2  ;;  %624 = vmatpush.bf16.msra.mxu1 %v1385_v3 }
  0x66   : > { %1308 = vmatmul.msk.bf16.vlgmr.msra.gmra.mxu0 %vm577_vm0, %v556_v6  ;;  %1317 = vmatmul.msk.bf16.vlgmr.msra.gmra.mxu1 %vm577_vm0, %v556_v6 }
  0xe3   : > { %v590_v9 = vpop.f32.mrf.mxu0  ;;  %v626_v10 = vpop.f32.mrf.mxu1 }
  0xe4   : > { %v591_v11 = vadd.f32 %v1561_v7, %v590_v9  ;;  %v627_v12 = vadd.f32 %v1562_v8, %v626_v10 }
  0xe6   : > { %v595_v13 = vpack.c.bf16 %v591_v11, %v591_v11  ;;  %v631_v14 = vpack.c.bf16 %v627_v12, %v627_v12 }
  0xe8   : > { %634 = vst.msk [vmem:[#allocation2] sm:$0xf] %vm633_vm1, %v595_v13  ;;  %651 = vrot.lane.b32.xlu1 %v631_v14, %s1916_s24  ;;  %660 = vrot.lane.b32.xlu2 %v595_v13, %s1917_s12 }
  0xe9   : > { %636 = vst.msk [vmem:[#allocation3] sm:$0xf] %vm633_vm1, %v631_v14  ;;  %640 = vrot.lane.b32.xlu0 %v595_v13, %s1916_s24 }
  0xeb   : > { %v592_v15 = vpop.f32.mrf.mxu0  ;;  %v628_v16 = vpop.f32.mrf.mxu1 }
  0xec   : > { %v593_v17 = vadd.f32 %v1561_v7, %v592_v15  ;;  %v629_v18 = vadd.f32 %v1562_v8, %v628_v16 }
  0xee   : > { %v596_v19 = vpack.c.bf16 %v593_v17, %v593_v17  ;;  %v632_v20 = vpack.c.bf16 %v629_v18, %v629_v18 }
  0xf0   : > { %635 = vst.msk [vmem:[#allocation2 + $0x4] sm:$0xf] %vm633_vm1, %v596_v19  ;;  %653 = vrot.lane.b32.xlu1 %v632_v20, %s1916_s24  ;;  %678 = vrot.lane.b32.xlu2 %v595_v13, %s1918_s9 }
  0xf1   : > { %637 = vst.msk [vmem:[#allocation3 + $0x4] sm:$0xf] %vm633_vm1, %v632_v20  ;;  %669 = vrot.lane.b32.xlu0 %v631_v14, %s1917_s12 }
  0xf8   : > { %671 = vrot.lane.b32.xlu1 %v632_v20, %s1917_s12  ;;  %662 = vrot.lane.b32.xlu2 %v596_v19, %s1917_s12 }
  0xf9   : > { %642 = vrot.lane.b32.xlu0 %v596_v19, %s1916_s24 }
 0x100   : > { %687 = vrot.lane.b32.xlu1 %v631_v14, %s1918_s9  ;;  %689 = vrot.lane.b32.xlu2 %v632_v20, %s1918_s9 }
 0x101   : > { %680 = vrot.lane.b32.xlu0 %v596_v19, %s1918_s9 }
 0x142   : > { %v661_v21 = vpop.permute.xlu2 %660 }
 0x143   : > { %667 = vst.msk [vmem:[#allocation2 + $0x10] sm:$0xf] %vm633_vm1, %v661_v21 }
 0x14a   : > { %v679_v22 = vpop.permute.xlu2 %678 }
 0x14b   : > { %685 = vst.msk [vmem:[#allocation2 + $0x18] sm:$0xf] %vm633_vm1, %v679_v22 }
 0x152   : > { %v663_v23 = vpop.permute.xlu2 %662 }
 0x153   : > { %668 = vst.msk [vmem:[#allocation2 + $0x14] sm:$0xf] %vm633_vm1, %v663_v23 }
 0x15a   : > { %v652_v24 = vpop.permute.xlu1 %651  ;;  %v690_v25 = vpop.permute.xlu2 %689 }
 0x15b   : > { %658 = vst.msk [vmem:[#allocation3 + $0x8] sm:$0xf] %vm633_vm1, %v652_v24  ;;  %v641_v26 = vpop.permute.xlu0 %640 }
 0x15c   : > { %695 = vst.msk [vmem:[#allocation3 + $0x1c] sm:$0xf] %vm633_vm1, %v690_v25 }
 0x15d   : > { %647 = vst.msk [vmem:[#allocation2 + $0x8] sm:$0xf] %vm633_vm1, %v641_v26 }
 0x162   : > { %v654_v27 = vpop.permute.xlu1 %653 }
 0x163   : > { %659 = vst.msk [vmem:[#allocation3 + $0xc] sm:$0xf] %vm633_vm1, %v654_v27  ;;  %v670_v28 = vpop.permute.xlu0 %669 }
 0x164   : > { %676 = vst.msk [vmem:[#allocation3 + $0x10] sm:$0xf] %vm633_vm1, %v670_v28 }
 0x16a   : > { %v672_v29 = vpop.permute.xlu1 %671 }
 0x16b   : > { %677 = vst.msk [vmem:[#allocation3 + $0x14] sm:$0xf] %vm633_vm1, %v672_v29  ;;  %v643_v30 = vpop.permute.xlu0 %642 }
 0x16c   : > { %648 = vst.msk [vmem:[#allocation2 + $0xc] sm:$0xf] %vm633_vm1, %v643_v30 }
 0x172   : > { %v688_v31 = vpop.permute.xlu1 %687 }
 0x173   : > { %694 = vst.msk [vmem:[#allocation3 + $0x18] sm:$0xf] %vm633_vm1, %v688_v31  ;;  %v681_v32 = vpop.permute.xlu0 %680 }
 0x174   : > { %686 = vst.msk [vmem:[#allocation2 + $0x1c] sm:$0xf] %vm633_vm1, %v681_v32 }
 0x175 PF: > { %v1388_v33 = vld [vmem:[#allocation11 + $0x8] sm:$0xff]  ;;  %s1318_s6 = sshll.u32 %s1890_s27, 3  ;;  %v1387_v34 = vld [vmem:[#allocation11] sm:$0xff]  ;;  %vm720_vm2 = vcmask 261120   ;;  %v1389_v37 = vld [vmem:[#allocation2] sm:$0xff]  ;;  %vm754_vm3 = vcmask 64512  }
 0x176   : > { %s697_s29 = scalar_lea.vmem %s2153_s20, %s1318_s6 [#allocation6]  ;;  %730 = vmatpush.bf16.msra.mxu0 %v1388_v33  ;;  %v759_v38 = vsel %vm754_vm3, %v1389_v37, 0  ;;  %v1391_v39 = vld [vmem:[#allocation2 + $0x8] sm:$0xff]  ;;  %v1393_v40 = vld [vmem:[#allocation2 + $0x10] sm:$0xff]  ;;  %s2364_s20 = sld [smem:[#allocation33_spill]]  ;;  %vm738_vm4 = vcmask 257024   ;;  %vm774_vm5 = vcmask 130048  }
 0x177   : > { %v2210_v35 = vld [vmem:[%s697_s29] sm:$0xff]  ;;  %768 = vmatpush.bf16.xpose.msra.mxu1 %v759_v38  ;;  %v833_v41 = vsel %vm754_vm3, %v1391_v39, 0  ;;  %v910_v42 = vsel %vm754_vm3, %v1393_v40, 0  ;;  %s1919_s0 = smov 112   ;;  %s1920_s11 = smov 120   ;;  %v1392_v25 = vld [vmem:[#allocation3 + $0x8] sm:$0xff] }
 0x178   : > { %v699_v36 = vpack.c.bf16 %v2210_v35, %v2210_v35  ;;  %842 = vmatpush.bf16.xpose.msra.mxu3 %v833_v41  ;;  %s1921_s14 = smov 104   ;;  %v1564_v62 = vld [vmem:[%s483_s2] ss:$0 sm:$0xff]  ;;  %vm810_vm6 = vcmask 60416   ;;  %s1922_s3 = smov 8   ;;  %vm887_vm7 = vcmask 126016  }
 0x179   : > { %v1390_v21 = vld [vmem:[#allocation3] sm:$0xff]  ;;  %s1923_s2 = smov 24   ;;  %s1924_s18 = smov 16   ;;  %vm964_vm8 = vcmask 191616   ;;  %vm1041_vm9 = vcmask 257216  }
 0x17a   : > { %731 = vmatpush.bf16.msra.mxu0 %v1387_v34  ;;  %803 = vmatpush.bf16.msra.mxu2 %v1390_v21  ;;  %s2365_s15 = sld [smem:[#allocation38_spill]]  ;;  %s1136_s21 = sshll.u32 %s548_s28, 4  ;;  %s1137_s21 = int_to_ptr.vmem [resolvable:$true] %s1136_s21 }
 0x17b   : > { %v1395_v58 = vld [vmem:[#allocation2 + $0x18] sm:$0xff]  ;;  %s2366_s24 = sld [smem:[#allocation25_spill]] }
 0x17c   : > { %v1563_v43 = vld [vmem:[%s2364_s20] ss:$0 sm:$0xff]  ;;  %v987_v59 = vsel %vm754_vm3, %v1395_v58, 0  ;;  %s2367_s10 = sld [smem:[#allocation39_spill]] }
 0x17d   : > { %1327 = vmatmul.msk.bf16.vlgmr.msra.gmra.mxu0 %vm720_vm2, %v699_v36 }
 0x17e   : > { %919 = vmatpush.bf16.xpose.msrb.mxu0 %v910_v42  ;;  %876 = vmatpush.bf16.msrb.mxu2 %v1392_v25 }
 0x180   : > { %996 = vmatpush.bf16.xpose.msrb.mxu3 %v987_v59 }
 0x181   : > { %s1378_s12 = sshll.u32 %s2366_s24, 1 }
 0x182   : > { %s1132_s9 = sadd.s32 %s1890_s27, %s1378_s12 }
 0x183   : > { %s1379_s6 = sshll.u32 %s1132_s9, 3 }
 0x1fa   : > { %v733_v44 = vpop.f32.mrf.mxu0 }
 0x1fb   : > { %v734_v45 = vadd.f32 %v1563_v43, %v733_v44  ;;  %v1396_v43 = vld [vmem:[#allocation3 + $0x18] sm:$0xff]  ;;  %v1394_v44 = vld [vmem:[#allocation3 + $0x10] sm:$0xff] }
 0x1fc   : > { %953 = vmatpush.bf16.msrb.mxu1 %v1394_v44 }
 0x1fd   : > { %v737_v46 = vpack.c.bf16 %v734_v45, %v734_v45 }
 0x1ff   : > { %739 = vst.msk [vmem:[#allocation4] sm:$0xf] %vm738_vm4, %v737_v46 }
 0x202   : > { %v735_v47 = vpop.f32.mrf.mxu0 }
 0x206   : > { %v744_v48 = vld [vmem:[#allocation4] sm:$0xf] }
 0x207   : > { %v889_v49 = vld [vmem:[#allocation4] sm:$0xf]  ;;  %1332 = vmatmul.msk.bf16.vlgmr.msra.gmra.mxu1 %vm754_vm3, %v744_v48 }
 0x208   : > { %v812_v50 = vld [vmem:[#allocation4] sm:$0xf]  ;;  %v897_v51 = vunpack.c.l.b16 %v889_v49 }
 0x209   : > { %v820_v52 = vunpack.c.l.b16 %v812_v50  ;;  %v966_v55 = vld [vmem:[#allocation4] sm:$0xf] }
 0x20a   : > { %v898_v53 = vpack.c.b16 %v897_v51, %v897_v51  ;;  %v974_v56 = vunpack.c.l.b16 %v966_v55 }
 0x20b   : > { %v821_v54 = vpack.c.b16 %v820_v52, %v820_v52 }
 0x20c   : > { %899 = vrot.lane.b32.xlu1 %v898_v53, %s1919_s0  ;;  %v975_v57 = vpack.c.b16 %v974_v56, %v974_v56 }
 0x20d   : > { %822 = vrot.lane.b32.xlu0 %v821_v54, %s1920_s11  ;;  %s2368_s11 = sld [smem:[#allocation41_spill]] }
 0x213   : > { %s1788_s29 = scalar_lea.hbm %s2368_s11, 32 }
 0x215   : > { %976 = vrot.lane.b32.xlu0 %v975_v57, %s1921_s14  ;;  %s1134_s14 = scalar_lea.hbm %s2368_s11, %s1379_s6 }
 0x216   : > { %s1138_s16 = sshll.u32 %s1134_s14, 4  ;;  %s1139_s16 = int_to_ptr.hbm [resolvable:$true] %s1138_s16 }
 0x217   : > { %s1782_s24 = sshra.s32 %s1139_s16, 4  ;;  %s1783_s24 = int_to_ptr.hbm [resolvable:$true] %s1782_s24 }
 0x218   : > { %s1784_s12 = scalar_lea.hbm %s1783_s24, 8  ;;  %p1789_p2 = scmp.lt.s32.totalorder %s1783_s24, %s2368_s11 }
 0x219   : > { %p1785_p1 = scmp.ne.s32.totalorder %s1783_s24, %s1784_s12  ;;  %p1790_p4 = scmp.lt.s32.totalorder %s1788_s29, %s1784_s12 }
 0x21b   : > { %p1786_p11 = pnand %p1785_p1, %p2062_p7  ;;  %p1791_p5 = por %p1790_p4, %p1789_p2 }
 0x21d   : > { %p1787_p0 = pneg %p1786_p11 }
 0x21f   : > { %p1792_p6 = pnand %p1791_p5, %p1787_p0 }
 0x27e   : > { %v900_v60 = vpop.permute.xlu1 %899 }
 0x27f   : > { %v823_v61 = vpop.permute.xlu0 %822  ;;  %1352 = vmatmul.msk.bf16.vlgmr.msrb.gmra.mxu0 %vm754_vm3, %v900_v60 }
 0x280   : > { %1342 = vmatmul.msk.bf16.vlgmr.msra.gmra.mxu3 %vm754_vm3, %v823_v61 }
 0x284   : > { %v770_v63 = vpop.f32.mrf.mxu1 }
 0x285   : > { %v771_v0 = vadd.f32 %v1564_v62, %v770_v63 }
 0x287   : > { %v775_v1 = vsel %vm774_vm5, %v771_v0, -inf  ;;  %v977_v3 = vpop.permute.xlu0 %976 }
 0x288   : > { %776 = vmax.xlane.f32.xlu1 %v775_v1 }
 0x28c   : > { %v772_v2 = vpop.f32.mrf.mxu1 }
 0x290   : > { %1362 = vmatmul.msk.bf16.vlgmr.msrb.gmra.mxu3 %vm754_vm3, %v977_v3 }
 0x2fb   : > { %v777_v11 = vpop.xlane.xlu1 %776 }
 0x2fc   : > { %v921_v4 = vpop.f32.mrf.mxu0  ;;  %v778_v13 = vsub.f32 %v771_v0, %v777_v11  ;;  %v1565_v11 = vld [vmem:[%s2365_s15] ss:$0 sm:$0xff]  ;;  %s1122_s15 = scalar_lea.sflag [#allocation8], %s546_s17 }
 0x2fd   : > { %v922_v5 = vadd.f32 %v1564_v62, %v921_v4 }
 0x2fe   : > { %v779_v14 = vmul.f32 1.442695, %v778_v13 }
 0x2ff   : > { %v925_v6 = vsel %vm774_vm5, %v922_v5, -inf }
 0x300   : > { %926 = vmax.xlane.f32.xlu0 %v925_v6  ;;  %1568 = vpow2.f32 %v779_v14 }
 0x303   : > { %v844_v7 = vpop.f32.mrf.mxu3 }
 0x304   : > { %v845_v8 = vadd.f32 %v1564_v62, %v844_v7  ;;  %v923_v9 = vpop.f32.mrf.mxu0  ;;  %v1397_v7 = vld [vmem:[#allocation15] sm:$0xff] }
 0x306   : > { %v848_v10 = vsel %vm774_vm5, %v845_v8, -inf  ;;  %v1569_v18 = vpop.eup %1568 }
 0x307   : > { %849 = vmax.xlane.f32.xlu2 %v848_v10  ;;  %v781_v20 = vsel %vm774_vm5, %v1569_v18, 0.0 }
 0x30b   : > { %v846_v12 = vpop.f32.mrf.mxu3 }
 0x313   : > { %v998_v15 = vpop.f32.mrf.mxu3 }
 0x314   : > { %v999_v16 = vadd.f32 %v1564_v62, %v998_v15 }
 0x316   : > { %v1002_v17 = vsel %vm774_vm5, %v999_v16, -inf }
 0x317   : > { %1003 = vmax.xlane.f32.xlu2 %v1002_v17  ;;  %v1925_v17 = vmov 32.0  }
 0x31b   : > { %v1000_v19 = vpop.f32.mrf.mxu3 }
 0x31f   : > { %782 = vadd.xlane.f32.xlu2 %v781_v20 }
 0x373   : > { %v927_v28 = vpop.xlane.xlu0 %926 }
 0x374   : > { %v928_v31 = vsub.f32 %v922_v5, %v927_v28  ;;  %v1398_v5 = vld [vmem:[#allocation15 + $0x8] sm:$0xff] }
 0x375   : > { %1073 = vmatpush.bf16.msra.mxu0 %v1398_v5 }
 0x376   : > { %v929_v33 = vmul.f32 1.442695, %v928_v31 }
 0x379   : > { %1074 = vmatpush.bf16.msra.mxu0 %v1397_v7 }
 0x37a   : > { %v850_v22 = vpop.xlane.xlu2 %849 }
 0x37b   : > { %v851_v23 = vsub.f32 %v845_v8, %v850_v22 }
 0x37d   : > { %v852_v24 = vmul.f32 1.442695, %v851_v23 }
 0x37f   : > { %1570 = vpow2.f32 %v852_v24 }
 0x385   : > { %v1571_v26 = vpop.eup %1570 }
 0x386   : > { %v854_v27 = vsel %vm774_vm5, %v1571_v26, 0.0 }
 0x387   : > { %855 = vadd.xlane.f32.xlu2 %v854_v27 }
 0x38a   : > { %v1004_v29 = vpop.xlane.xlu2 %1003 }
 0x38b   : > { %v1005_v30 = vsub.f32 %v999_v16, %v1004_v29 }
 0x38d   : > { %v1006_v32 = vmul.f32 1.442695, %v1005_v30 }
 0x38f   : > { %1572 = vpow2.f32 %v1006_v32 }
 0x392   : > { %v783_v34 = vpop.xlane.xlu2 %782 }
 0x393   : > { %1574 = vrcp.f32 %v783_v34 }
 0x394   : > { %1576 = vpow2.f32 %v929_v33 }
 0x395   : > { %v1573_v36 = vpop.eup %1572 }
 0x396   : > { %v1008_v37 = vsel %vm774_vm5, %v1573_v36, 0.0 }
 0x397   : > { %1009 = vadd.xlane.f32.xlu2 %v1008_v37 }
 0x399   : > { %v1575_v38 = vpop.eup %1574 }
 0x39a   : > { %v785_v39 = vmul.f32 %v1575_v38, %v1569_v18  ;;  %v1577_v40 = vpop.eup %1576  ;;  %v1566_v38 = vld [vmem:[%s2367_s10] ss:$0 sm:$0xff] }
 0x39b   : > { %v931_v42 = vsel %vm774_vm5, %v1577_v40, 0.0 }
 0x39c   : > { %v786_v41 = vpack.c.bf16 %v785_v39, %v785_v39 }
 0x39e   : > { %1337 = vmatmul.msk.bf16.vlgmr.msra.gmra.mxu2 %vm774_vm5, %v786_v41 }
 0x39f   : > { %932 = vadd.xlane.f32.xlu2 %v931_v42  ;;  %1030 = vmatpush.bf16.msra.mxu2 %v1396_v43 }
 0x3fa   : > { %v856_v45 = vpop.xlane.xlu2 %855 }
 0x3fb   : > { %1578 = vrcp.f32 %v856_v45 }
 0x401   : > { %v1579_v46 = vpop.eup %1578 }
 0x402   : > { %v858_v47 = vmul.f32 %v1579_v46, %v1571_v26 }
 0x404   : > { %v859_v48 = vpack.c.bf16 %v858_v47, %v858_v47 }
 0x406   : > { %1347 = vmatmul.msk.bf16.vlgmr.msrb.gmra.mxu2 %vm774_vm5, %v859_v48 }
 0x40a   : > { %v1010_v49 = vpop.xlane.xlu2 %1009 }
 0x40b   : > { %1580 = vrcp.f32 %v1010_v49 }
 0x411   : > { %v1581_v50 = vpop.eup %1580 }
 0x412   : > { %v1012_v51 = vmul.f32 %v1581_v50, %v1573_v36  ;;  %v933_v52 = vpop.xlane.xlu2 %932 }
 0x413   : > { %1582 = vrcp.f32 %v933_v52 }
 0x414   : > { %v1013_v53 = vpack.c.bf16 %v1012_v51, %v1012_v51  ;;  %1584 = vrcp.f32 %v1925_v17 }
 0x416   : > { %1367 = vmatmul.msk.bf16.vlgmr.msra.gmra.mxu2 %vm774_vm5, %v1013_v53 }
 0x419   : > { %v1583_v54 = vpop.eup %1582 }
 0x41a   : > { %v935_v55 = vmul.f32 %v1583_v54, %v1577_v40  ;;  %v1585_v18 = vpop.eup %1584 }
 0x41b   : > { %v1085_v19 = vmul.f32 32.0, %v1585_v18  ;;  %vm1089_vm10 = vweird.f32 %v1585_v18 }
 0x41c   : > { %v936_v56 = vpack.c.bf16 %v935_v55, %v935_v55 }
 0x41d   : > { %v1086_v20 = vsub.f32 1.0, %v1085_v19 }
 0x41e   : > { %1357 = vmatmul.msk.bf16.vlgmr.msrb.gmra.mxu1 %vm774_vm5, %v936_v56 }
 0x41f   : > { %v1087_v21 = vmul.f32 %v1585_v18, %v1086_v20 }
 0x421   : > { %v805_v57 = vpop.f32.mrf.mxu2  ;;  %v1088_v22 = vadd.f32 %v1585_v18, %v1087_v21 }
 0x422   : > { %v809_v58 = vpack.c.bf16 %v805_v57, %v805_v57 }
 0x423   : > { %v1090_v23 = vsel %vm1089_vm10, %v1585_v18, %v1088_v22 }
 0x424   : > { %811 = vst.msk [vmem:[#allocation5] sm:$0xf] %vm810_vm6, %v809_v58 }
 0x429   : > { %v807_v59 = vpop.f32.mrf.mxu2 }
 0x489   : > { %v878_v60 = vpop.f32.mrf.mxu2 }
 0x48a   : > { %v882_v61 = vpack.c.bf16 %v878_v60, %v878_v60 }
 0x48c   : > { %884 = vrot.lane.b32.xlu2 %v882_v61, %s1922_s3 }
 0x491   : > { %v880_v62 = vpop.f32.mrf.mxu2 }
 0x499   : > { %v1032_v63 = vpop.f32.mrf.mxu2 }
 0x49a   : > { %v1036_v0 = vpack.c.bf16 %v1032_v63, %v1032_v63 }
 0x49b   : > { %v955_v1 = vpop.f32.mrf.mxu1 }
 0x49c   : > { %v959_v2 = vpack.c.bf16 %v955_v1, %v955_v1  ;;  %1038 = vrot.lane.b32.xlu0 %v1036_v0, %s1923_s2 }
 0x49e   : > { %961 = vrot.lane.b32.xlu1 %v959_v2, %s1924_s18  ;;  %s2370_s18 = sld [smem:[#allocation40_spill]] }
 0x4a1   : > { %v1034_v3 = vpop.f32.mrf.mxu2 }
 0x4a3   : > { %v957_v4 = vpop.f32.mrf.mxu1 }
 0x4a4   : > { %v1567_v41 = vld [vmem:[%s2370_s18] ss:$0 sm:$0xff] }
 0x4e6   : > { %v885_v6 = vpop.permute.xlu2 %884 }
 0x4e7   : > { %888 = vst.msk [vmem:[#allocation5] sm:$0xf] %vm887_vm7, %v885_v6 }
 0x50e   : > { %v1039_v9 = vpop.permute.xlu0 %1038 }
 0x510   : > { %v962_v8 = vpop.permute.xlu1 %961 }
 0x511   : > { %965 = vst.msk [vmem:[#allocation5] sm:$0xf] %vm964_vm8, %v962_v8 }
 0x512   : > { %1042 = vst.msk [vmem:[#allocation5] sm:$0xf] %vm1041_vm9, %v1039_v9 }
 0x519   : > { %v1043_v10 = vld [vmem:[#allocation5] sm:$0xf] }
 0x51a   : > { %1376 = vmatmul.msk.bf16.vlgmr.msra.gmra.mxu0 %vm720_vm2, %v1043_v10 }
 0x597   : > { %v1076_v12 = vpop.f32.mrf.mxu0 }
 0x598   : > { %v1077_v13 = vadd.f32 %v1565_v11, %v1076_v12 }
 0x59a   : > { %v1080_v14 = vadd.f32 %v1077_v13, %v2210_v35 }
 0x59c   : > { %v1081_v15 = vsel %vm720_vm2, %v1080_v14, 0.0 }
 0x59d   : > { %1082 = vadd.xlane.f32.xlu2 %v1081_v15 }
 0x59f   : > { %v1078_v16 = vpop.f32.mrf.mxu0 }
 0x610   : > { %v1083_v24 = vpop.xlane.xlu2 %1082 }
 0x611   : > { %v1091_v25 = vmul.f32 %v1090_v23, %v1083_v24 }
 0x613   : > { %v1092_v26 = vsub.f32 %v1080_v14, %v1091_v25 }
 0x615   : > { %v1093_v27 = vmul.f32 %v1092_v26, %v1092_v26 }
 0x617   : > { %v1094_v35 = vsel %vm720_vm2, %v1093_v27, 0.0 }
 0x618   : > { %1095 = vadd.xlane.f32.xlu1 %v1094_v35 }
 0x68b   : > { %v1096_v28 = vpop.xlane.xlu1 %1095 }
 0x68c   : > { %v1097_v29 = vmul.f32 %v1096_v28, %v1090_v23 }
 0x68e   : > { %v1098_v30 = vadd.f32 1e-05, %v1097_v29 }
 0x690   : > { %1586 = vrsqrt.f32 %v1098_v30  ;;  %vm1105_vm12 = vweird.f32 %v1098_v30 }
 0x696   : > { %v1587_v31 = vpop.eup %1586 }
 0x697   : > { %v1100_v32 = vmul.f32 %v1587_v31, %v1098_v30  ;;  %vm1106_vm11 = vweird.f32 %v1587_v31 }
 0x698   : > { %vm1107_vm13 = vmor %vm1105_vm12, %vm1106_vm11 }
 0x699   : > { %v1101_v33 = vmul.f32 %v1587_v31, %v1100_v32 }
 0x69b   : > { %v1102_v34 = vmul.f32 0.5, %v1101_v33 }
 0x69d   : > { %v1103_v36 = vsub.f32 1.5, %v1102_v34 }
 0x69f   : > { %v1104_v37 = vmul.f32 %v1587_v31, %v1103_v36 }
 0x6a1   : > { %v1108_v39 = vsel %vm1107_vm13, %v1587_v31, %v1104_v37 }
 0x6a2   : > { %v1109_v40 = vmul.f32 %v1108_v39, %v1092_v26 }
 0x6a4   : > { %v1114_v42 = vmul.f32 %v1566_v38, %v1109_v40 }
 0x6a6   : > { %v1119_v43 = vadd.f32 %v1567_v41, %v1114_v42 }
 0x6a8   : > { %1120 = vst.msk [vmem:[%s548_s28] sm:$0xff] %vm720_vm2, %v1119_v43 }
 0x6a9   : > { %1795 = shalt.err (!%p1792_p6)
}
 0x6aa   : > { %1419 = dma.vmem_to_hbm [thread:$0]  (%p2062_p7), %s1137_s21, 128, %s1139_s16, %s1122_s15  }
 0x6ab PF: > { %s2371_s17 = sld [smem:[#allocation24_spill]]  ;;  %p1454_p8 = scmp.ge.s32.totalorder %s1906_s13, 2 }
 0x6ad   : > { %p1442_p10 = pnand %p1454_p8, %p2067_p9 }
 0x6af   : > { %p1443_p12 = pneg %p1442_p10 }
 0x6b1   : > { %s1150_s28 = sand.u32 1, %s2371_s17  }
 0x6b2   : > { %s1151_s20 = scalar_lea.sflag [#allocation8], %s1150_s28 }
 0x6b3   : > { %1861 = dma.done.wait (%p1443_p12), %s1151_s20, 128  }
 0x6b4   : > { %1863 = vsyncadd (%p1443_p12), %s1151_s20, 4294967168  ;;  %s33_s13 = sadd.s32 1, %s1906_s13   ;;  %s2373_s27 = sld [smem:[#allocation26_spill]] }
 0x6b5   : > { %p30_p13 = scmp.ge.s32.totalorder %s33_s13, 6   ;;  %s2374_s29 = sld [smem:[#allocation29_spill]] }
 0x6b6   : > { %s2375_s0 = sld [smem:[#allocation30_spill]]  ;;  %s2376_s21 = smov %s1870_s22 }
 0x6b7   : > { %s2377_s22 = smov %s1874_s23  ;;  %s2378_s23 = smov %s2135_s8 }
 0x6b8   : > { %s2379_s24 = smov %s1882_s25  ;;  %s2380_s25 = smov %s1886_s26 }
 0x6b9   : > { %s2381_s26 = smov %s2130_s4  ;;  %s2382_s28 = smov %s1902_s30 }
 0x6ba   :  { %32 = sbr.rel (!%p30_p13) target bundleno = 25 (0x19), region = 159 }
 0x6bc   : > { %s2383_s30 = smov %s2375_s0 }
 0x6bf   :  { %1157 = vsyncpa [#allocation7], 1 }
 0x6c0   :  { %1159 = vsyncpa [#allocation7 + $0x1], 1 }
 0x6c1   :  { %1160 = vsyncpa [#allocation10], 1 }
 0x6c2   :  { %1162 = vsyncpa [#allocation10 + $0x1], 1 }
 0x6c3   :  { %1163 = vsyncpa [#allocation13], 1 }
 0x6c4   :  { %1164 = vsyncpa [#allocation16], 1 }
 0x6c5   :  { %1165 = vsyncpa [#allocation8], 1 }
 0x6c6   :  { %1167 = vsyncpa [#allocation8 + $0x1], 1 }

</bundles_post_ra>
